<compile_context>
chip_gen: v7x
topology: tpu7x:2x2x1
jax: 0.10.0
libtpu: 0.0.40
codegen_flags: <defaults>
</compile_context>

<pallas_src>
import jax
import jax.numpy as jnp
from jax.experimental import pallas as pl
from jax.experimental.pallas import tpu as pltpu


def _round_up(x, m):
    return ((x + m - 1) // m) * m


# ----------------------------------------------------------------------------
# Batched dense kernel: y = x @ w + b, tiled over M (rows) and N (cols).
# Used for (1) the input-to-gates projection and (3) the vocab projection.
# ----------------------------------------------------------------------------
def _dense_kernel(x_ref, w_ref, b_ref, o_ref):
    acc = jnp.dot(x_ref[...], w_ref[...], preferred_element_type=jnp.float32)
    o_ref[...] = (acc + b_ref[...]).astype(o_ref.dtype)


def _dense(x, w, b, *, out_dtype, m_tile=256, n_tile=512):
    """x: (M, K) bf16, w: (K, N) bf16 (N pre-padded: N % 128 == 0 and N % min(n_tile, N) == 0),
    b: (1, N) f32.  Returns (Mp, N) in out_dtype with Mp = round_up(M, tm)."""
    M, K = x.shape
    N = w.shape[1]
    assert N % 128 == 0, N
    tn = min(n_tile, N)
    assert N % tn == 0, (N, tn)
    tm = min(m_tile, _round_up(M, 8))
    Mp = _round_up(M, tm)
    if Mp != M:
        x = jnp.pad(x, ((0, Mp - M), (0, 0)))

    # VMEM budget from the actual (double-buffered) tile footprint + slack.
    out_bytes = jnp.dtype(out_dtype).itemsize
    need = (2 * tm * K * 2 + 2 * K * tn * 2 + 2 * tn * 4
            + 2 * tm * tn * out_bytes + (2 << 20))
    vmem = int(min(max(need, 32 << 20), 128 << 20))

    return pl.pallas_call(
        _dense_kernel,
        out_shape=jax.ShapeDtypeStruct((Mp, N), out_dtype),
        grid_spec=pltpu.PrefetchScalarGridSpec(
            num_scalar_prefetch=0,
            # M outer, N inner: the activation tile stays resident across the N sweep.
            grid=(Mp // tm, N // tn),
            in_specs=[
                pl.BlockSpec((tm, K), lambda i, j: (i, 0)),   # activations (resident over j)
                pl.BlockSpec((K, tn), lambda i, j: (0, j)),   # weight tile over N
                pl.BlockSpec((1, tn), lambda i, j: (0, j)),   # bias tile
            ],
            out_specs=pl.BlockSpec((tm, tn), lambda i, j: (i, j)),
        ),
        compiler_params=pltpu.CompilerParams(
            dimension_semantics=("parallel", "parallel"),     # megacore-shardable
            vmem_limit_bytes=vmem),
    )(x, w, b)


# ----------------------------------------------------------------------------
# Recurrent LSTM kernel: whole sequence in a single invocation.
# ----------------------------------------------------------------------------
def _lstm_kernel(xg_ref, w_hh_ref, h_out_ref):
    """Run the full T-step LSTM recurrence with an in-kernel fori_loop.

    xg_ref    : (T, Bp, 4Hp) bf16  precomputed  x_t @ W_ih^T + (b_ih + b_hh)
    w_hh_ref  : (Hp, 4Hp)    bf16  hidden->gates weight (pre-transposed, gate-block padded)
    h_out_ref : (T, Bp, Hp)  bf16  per-step hidden states (LSTM output)
    """
    T, Bp, G = xg_ref.shape
    Hp = G // 4
    w_hh = w_hh_ref[...]                                     # loaded once, stays resident

    def step(t, carry):
        h, c = carry                                         # (Bp, Hp) f32 state
        gates = (xg_ref[t].astype(jnp.float32)
                 + jnp.dot(h.astype(jnp.bfloat16), w_hh,
                           preferred_element_type=jnp.float32))
        # gate order matches PyTorch nn.LSTM: i, f, g, o.  Hp % 128 == 0 so every slice below
        # is lane-tile aligned (no masked / cross-lane ops on the serial chain).
        i_g = jax.nn.sigmoid(gates[:, 0 * Hp:1 * Hp])
        f_g = jax.nn.sigmoid(gates[:, 1 * Hp:2 * Hp])
        g_g = jnp.tanh(gates[:, 2 * Hp:3 * Hp])
        o_g = jax.nn.sigmoid(gates[:, 3 * Hp:4 * Hp])
        c_new = f_g * c + i_g * g_g
        h_new = o_g * jnp.tanh(c_new)
        h_out_ref[t] = h_new.astype(h_out_ref.dtype)
        return (h_new, c_new)

    h0 = jnp.zeros((Bp, Hp), jnp.float32)
    c0 = jnp.zeros((Bp, Hp), jnp.float32)
    # TODO(synk): sweep unroll in {1,2,4} against the bundle dump; unroll=2 kept as a default
    # that avoids excessive vreg pressure at realistic Bp/Hp.
    jax.lax.fori_loop(0, T, step, (h0, c0), unroll=2)


# ----------------------------------------------------------------------------
# One-time parameter preparation (hoisted off the hot path).
# ----------------------------------------------------------------------------
def prepare_params(params, *, n_tile=512):
    """Cast weights to bf16 and pad: H -> Hp (multiple of 128, per-gate blocks), V -> Vp
    (multiple of 128 and of the N tile).  Zero padding is exact: padded gate pre-activations
    are 0 -> padded h/c columns stay identically 0 and never pollute real outputs."""
    H = params["w_hh_t"].shape[0]
    V = params["w_out_t"].shape[1]
    Hp = _round_up(H, 128)

    def pad_gate_cols(w):                     # (..., 4H) -> (..., 4Hp), per-gate zero pad
        lead = w.shape[:-1]
        w = w.reshape(lead + (4, H))
        w = jnp.pad(w, [(0, 0)] * len(lead) + [(0, 0), (0, Hp - H)])
        return w.reshape(lead + (4 * Hp,))

    w_ih = pad_gate_cols(params["w_ih_t"])                                  # (E, 4Hp)
    w_hh = jnp.pad(pad_gate_cols(params["w_hh_t"]), ((0, Hp - H), (0, 0)))  # (Hp, 4Hp)
    b_gates = pad_gate_cols((params["b_ih"] + params["b_hh"])[None, :])     # (1, 4Hp)

    Vp = _round_up(V, 128)
    if Vp > n_tile:
        Vp = _round_up(Vp, n_tile)
    w_out = jnp.pad(params["w_out_t"], ((0, Hp - H), (0, Vp - V)))          # (Hp, Vp)
    b_out = jnp.pad(params["b_out"], (0, Vp - V))[None, :]                  # (1, Vp)

    return {
        "embed_w": params["embed_w"],
        "w_ih_t": w_ih.astype(jnp.bfloat16),
        "w_hh_t": w_hh.astype(jnp.bfloat16),
        "b_gates": b_gates.astype(jnp.float32),
        "w_out_t": w_out.astype(jnp.bfloat16),
        "b_out": b_out.astype(jnp.float32),
        "H": H, "Hp": Hp, "V": V, "Vp": Vp,
    }


# ----------------------------------------------------------------------------
# Wrapper reproducing DecoderRNN.forward semantics.
# ----------------------------------------------------------------------------
def decoder_rnn_forward(features, captions, cparams, *, m_tile=256, n_tile=512):
    """features: (B, E) f32, captions: (B, L) int32 -> logits (B, L, V) f32."""
    B, E = features.shape
    H, Hp, V = cparams["H"], cparams["Hp"], cparams["V"]

    # ---- glue: embedding gather, built directly time-major (folds the transpose) ----
    # TODO(synk): jnp.take clamps out-of-range token ids; PyTorch nn.Embedding would error.
    caps = captions[:, :-1]                                         # (B, L-1)
    emb_tm = jnp.take(cparams["embed_w"], caps.T, axis=0)           # (L-1, B, E)
    x_tm = jnp.concatenate(
        [features[None, :, :].astype(jnp.float32), emb_tm], axis=0)  # (T, B, E)
    T = x_tm.shape[0]                                               # T == captions.shape[1]

    # ---- pad batch to a sublane multiple; bf16 matmul operands, f32 accumulation ----
    Bp = _round_up(max(B, 8), 8)
    x_tm = jnp.pad(x_tm, ((0, 0), (0, Bp - B), (0, 0))).astype(jnp.bfloat16)

    # ---- (1) input-to-gates projection, batched over all T*Bp rows (off critical path);
    #          bf16 output halves the intermediate's HBM/VMEM footprint ----
    xg = _dense(x_tm.reshape(T * Bp, E), cparams["w_ih_t"], cparams["b_gates"],
                out_dtype=jnp.bfloat16, m_tile=m_tile, n_tile=n_tile)
    xg_tm = xg[:T * Bp].reshape(T, Bp, 4 * Hp)

    # ---- (2) recurrent LSTM: whole sequence, single kernel invocation, VMEM-resident ----
    xg_bytes = T * Bp * 4 * Hp * 2
    h_bytes = T * Bp * Hp * 2
    w_bytes = Hp * 4 * Hp * 2
    lstm_vmem = int(min(max(int(1.5 * (xg_bytes + h_bytes + w_bytes)) + (4 << 20),
                            32 << 20), 128 << 20))
    lstm_cost = pl.CostEstimate(
        flops=int(T * (2 * Bp * Hp * 4 * Hp + 10 * Bp * Hp)),
        transcendentals=int(T * 5 * Bp * Hp),
        bytes_accessed=int(xg_bytes + h_bytes + w_bytes))

    h_tm = pl.pallas_call(
        _lstm_kernel,
        out_shape=jax.ShapeDtypeStruct((T, Bp, Hp), jnp.bfloat16),
        in_specs=[
            pl.BlockSpec(memory_space=pltpu.MemorySpace.VMEM),   # xg (single copy, no pipeline)
            pl.BlockSpec(memory_space=pltpu.MemorySpace.VMEM),   # W_hh^T
        ],
        out_specs=pl.BlockSpec(memory_space=pltpu.MemorySpace.VMEM),
        compiler_params=pltpu.CompilerParams(vmem_limit_bytes=lstm_vmem),
        cost_estimate=lstm_cost,
    )(xg_tm, cparams["w_hh_t"])

    # ---- (3) transpose the SMALL hidden tensor (not the logits) to (B, T, Hp) first, then
    #          do the vocab projection on exactly B*T rows -> logits come out in (B, T, V) ----
    h_bt = jnp.transpose(h_tm[:, :B, :], (1, 0, 2)).reshape(B * T, Hp)   # bf16, glue transpose
    logits = _dense(h_bt, cparams["w_out_t"], cparams["b_out"],
                    out_dtype=jnp.float32, m_tile=m_tile, n_tile=n_tile)  # (Mp, Vp) f32
    # (bf16 logits writeback is a one-line out_dtype change if the downstream loss tolerates it)

    return logits[:B * T, :V].reshape(B, T, V)


# ----------------------------------------------------------------------------
# Pure-JAX f32 reference (PyTorch semantics) for validation.
# ----------------------------------------------------------------------------
def _reference_forward(features, captions, params):
    caps = captions[:, :-1]
    emb = jnp.take(params["embed_w"], caps, axis=0)
    inputs = jnp.concatenate([features[:, None, :], emb], axis=1)
    B, T, E = inputs.shape
    H = params["w_hh_t"].shape[0]
    b = params["b_ih"] + params["b_hh"]

    def step(carry, x_t):
        h, c = carry
        gates = x_t @ params["w_ih_t"] + h @ params["w_hh_t"] + b
        i = jax.nn.sigmoid(gates[:, 0 * H:1 * H])
        f = jax.nn.sigmoid(gates[:, 1 * H:2 * H])
        g = jnp.tanh(gates[:, 2 * H:3 * H])
        o = jax.nn.sigmoid(gates[:, 3 * H:4 * H])
        c = f * c + i * g
        h = o * jnp.tanh(c)
        return (h, c), h

    h0 = jnp.zeros((B, H), jnp.float32)
    c0 = jnp.zeros((B, H), jnp.float32)
    _, hs = jax.lax.scan(step, (h0, c0), jnp.transpose(inputs, (1, 0, 2)))
    hiddens = jnp.transpose(hs, (1, 0, 2))
    return hiddens @ params["w_out_t"] + params["b_out"]


def init_params(key, embed_size, hidden_size, vocab_size):
    """Deterministic init matching the PyTorch module's shapes / init_weights."""
    k = jax.random.split(key, 6)
    lim = 1.0 / jnp.sqrt(hidden_size)
    return {
        # embed.weight.uniform_(-0.1, 0.1)
        "embed_w": jax.random.uniform(k[0], (vocab_size, embed_size),
                                      jnp.float32, -0.1, 0.1),
        # nn.LSTM default init U(-1/sqrt(H), 1/sqrt(H)); stored transposed (E,4H)/(H,4H)
        "w_ih_t": jax.random.uniform(k[1], (embed_size, 4 * hidden_size),
                                     jnp.float32, -lim, lim),
        "w_hh_t": jax.random.uniform(k[2], (hidden_size, 4 * hidden_size),
                                     jnp.float32, -lim, lim),
        "b_ih": jax.random.uniform(k[3], (4 * hidden_size,), jnp.float32, -lim, lim),
        "b_hh": jax.random.uniform(k[4], (4 * hidden_size,), jnp.float32, -lim, lim),
        # linear.weight.uniform_(-0.1, 0.1), bias = 0; stored transposed (H, V)
        "w_out_t": jax.random.uniform(k[5], (hidden_size, vocab_size),
                                      jnp.float32, -0.1, 0.1),
        "b_out": jnp.zeros((vocab_size,), jnp.float32),
    }


if __name__ == "__main__":
    # small shapes consistent with the module
    batch = 2
    seq = 8            # captions have seq+1 tokens; forward output length T = seq + 1
    embed_size = 32
    hidden_size = 32
    vocab_size = 128

    key = jax.random.PRNGKey(0)
    kf, kc, kp = jax.random.split(key, 3)

    features = jax.random.normal(kf, (batch, embed_size), jnp.float32)
    captions = jax.random.randint(kc, (batch, seq + 1), 0, vocab_size, jnp.int32)
    params = init_params(kp, embed_size, hidden_size, vocab_size)
    cparams = prepare_params(params)     # one-time bf16 cast + padding, off the hot path

    out = jax.block_until_ready(decoder_rnn_forward(features, captions, cparams))
    # T = 1 (image feature) + (captions.shape[1] - 1) caption tokens = captions.shape[1]
    T = captions.shape[1]
    assert out.shape == (batch, T, vocab_size), out.shape

    ref = jax.block_until_ready(_reference_forward(features, captions, params))
    # tolerance accounts for bf16 matmul operands and the bf16 gate pre-activations
    # (accumulation and LSTM state are f32)
    if not jnp.allclose(out, ref, atol=5e-2, rtol=5e-2):
        err = float(jnp.max(jnp.abs(out - ref)))
        raise AssertionError(f"Pallas output does not match JAX reference (max|err|={err})")

    print("KERNEL_OK")
</pallas_src>

<mosaic_0001>
module attributes {stable_mosaic.version = 11 : i64} {
  func.func @_dense_kernel(%arg0: i32, %arg1: i32, %arg2: memref<72x32xbf16, #tpu.memory_space<vmem>>, %arg3: memref<32x512xbf16, #tpu.memory_space<vmem>>, %arg4: memref<1x512xf32, #tpu.memory_space<vmem>>, %arg5: memref<72x512xbf16, #tpu.memory_space<vmem>>) attributes {dimension_semantics = [#tpu.dimension_semantics<parallel>, #tpu.dimension_semantics<parallel>], iteration_bounds = array<i64: 1, 1>, scalar_prefetch = 0 : i64, scratch_operands = 0 : i64, tpu.core_type = #tpu.core_type<tc>, window_params = [{transform_indices = @transform_0, window_bounds = array<i64: 72, 32>}, {transform_indices = @transform_1, window_bounds = array<i64: 32, 512>}, {transform_indices = @transform_2, window_bounds = array<i64: 1, 512>}, {transform_indices = @transform_3, window_bounds = array<i64: 72, 512>}]} {
    %c0 = arith.constant 0 : index
    %c0_0 = arith.constant 0 : index
    %0 = vector.load %arg2[%c0, %c0_0] : memref<72x32xbf16, #tpu.memory_space<vmem>>, vector<72x32xbf16>
    %c0_1 = arith.constant 0 : index
    %c0_2 = arith.constant 0 : index
    %1 = vector.load %arg3[%c0_1, %c0_2] : memref<32x512xbf16, #tpu.memory_space<vmem>>, vector<32x512xbf16>
    %cst = arith.constant dense<0.000000e+00> : vector<72x512xf32>
    %2 = tpu.matmul %0, %1, %cst {dimension_numbers = #tpu.dot_dimension_numbers<[1], [0], [0], [1], [0, 0, 1, 1], [], []>} : vector<72x32xbf16>, vector<32x512xbf16>, vector<72x512xf32> -> vector<72x512xf32>
    %c0_3 = arith.constant 0 : index
    %c0_4 = arith.constant 0 : index
    %3 = vector.load %arg4[%c0_3, %c0_4] : memref<1x512xf32, #tpu.memory_space<vmem>>, vector<1x512xf32>
    %4 = vector.broadcast %3 : vector<1x512xf32> to vector<72x512xf32>
    %5 = arith.addf %2, %4 : vector<72x512xf32>
    %6 = arith.truncf %5 : vector<72x512xf32> to vector<72x512xbf16>
    %c0_5 = arith.constant 0 : index
    %c0_6 = arith.constant 0 : index
    %7 = vector.load %arg5[%c0_5, %c0_6] : memref<72x512xbf16, #tpu.memory_space<vmem>>, vector<72x512xbf16>
    tpu.vector_store %arg5[%c0_5, %c0_6], %6 {strides = array<i32>} : memref<72x512xbf16, #tpu.memory_space<vmem>>, vector<72x512xbf16>,
    return
  }
  func.func @transform_0(%arg0: i32, %arg1: i32) -> (i32, i32) {
    %c0_i32 = arith.constant 0 : i32
    %c0_i32_0 = arith.constant 0 : i32
    return %arg0, %c0_i32 : i32, i32
  }
  func.func @transform_1(%arg0: i32, %arg1: i32) -> (i32, i32) {
    %c0_i32 = arith.constant 0 : i32
    %c0_i32_0 = arith.constant 0 : i32
    return %c0_i32, %arg1 : i32, i32
  }
  func.func @transform_2(%arg0: i32, %arg1: i32) -> (i32, i32) {
    %c0_i32 = arith.constant 0 : i32
    %c0_i32_0 = arith.constant 0 : i32
    return %c0_i32, %arg1 : i32, i32
  }
  func.func @transform_3(%arg0: i32, %arg1: i32) -> (i32, i32) {
    %c0_i32 = arith.constant 0 : i32
    return %arg0, %arg1 : i32, i32
  }
}

</mosaic_0001>

<bundles_post_ra>
// kernel: tpu_custom_call.1
= control target key start
LH: loop header
LB: loop body
LE: loop exit
PB: predicated region body
PF: predicated region fallthrough
CT: control target
= control target key end

     0   :  { %8 = vsyncpa [#allocation3], 0  ;;  %s713_s0 = inlined_call_operand.vmem [shape: bf16[72,32], index: 0, kind: input, shape index: {}]   ;;  %s714_s1 = inlined_call_operand.hbm [shape: bf16[32,512], index: 1, kind: input, shape index: {}]   ;;  %s715_s2 = inlined_call_operand.vmem [shape: f32[1,512], index: 2, kind: input, shape index: {}]   ;;  %s716_s3 = inlined_call_operand.hbm [shape: bf16[72,512], index: 3, kind: output, shape index: {}]  }
   0x1   :  { %9 = vsyncpa [#allocation4], 0  ;;  %s586_s12 = smov [#allocation2]   ;;  %s538_s16 = scalar_lea.hbm %s714_s1, 1024 }
   0x2   :  { %s17_s13 = sshll.u32 %s586_s12, 4  ;;  %p539_p0 = scmp.ne.s32.totalorder %s714_s1, %s538_s16  ;;  %s18_s13 = int_to_ptr.vmem [resolvable:$true] %s17_s13 }
   0x3   :  { %p542_p1 = scmp.lt.u32.totalorder %s538_s16, %s714_s1 }
   0x5   :  { %p544_p2 = pnand %p542_p1, %p539_p0 }
   0x7   :  { %547 = shalt.err (!%p544_p2)
}
   0x8   :  { %s548_s21 = scalar_lea.vmem %s18_s13, 1024  ;;  %p553_p4 = scmp.lt.s32.totalorder %s18_s13, %s18_s13 }
   0x9   :  { %p549_p3 = scmp.ne.s32.totalorder %s18_s13, %s548_s21  ;;  %p554_p5 = scmp.lt.s32.totalorder %s548_s21, %s548_s21 }
   0xb   :  { %p555_p6 = por %p554_p5, %p553_p4 }
   0xd   :  { %p556_p7 = pnand %p555_p6, %p549_p3 }
   0xf   :  { %559 = shalt.err (!%p556_p7)
}
  0x10   :  { %s587_s22 = smov 256   ;;  %s588_s23 = smov 16  }
  0x11   :  { %23 = dma.hbm_to_vmem [thread:$0]  %s714_s1, 1024, %s18_s13, [#allocation3], %s587_s22, %s587_s22, %s588_s23  }
  0x12   :  { %582 = dma.done.wait [#allocation3], 1024  }
  0x13   :  { %583 = vsyncadd [#allocation3], 4294966272  ;;  %v589_v0 = vmov 0   ;;  %v521_v1 = vld [vmem:[#allocation2 + $0x4] ss:$16 sps:$4 sm:$0xff]   ;;  %v533_v9 = vld [vmem:[%s713_s0] sm:$0xff]   ;;  %v49_v14 = vlaneseq }
  0x14   :  { %180 = vmatprep.mubr.bf16.mxu0 %v589_v0  ;;  %261 = vmatprep.mubr.bf16.mxu1 %v589_v0  ;;  %v523_v2 = vld [vmem:[#allocation2 + $0xc] ss:$16 sps:$4 sm:$0xff]   ;;  %v525_v3 = vld [vmem:[#allocation2] ss:$16 sps:$4 sm:$0xff]   ;;  %v526_v4 = vld [vmem:[#allocation2 + $0x8] ss:$16 sps:$4 sm:$0xff]  }
  0x15   :  { %148 = vmatprep.subr.bf16.mxu0 %v521_v1  ;;  %229 = vmatprep.subr.bf16.mxu1 %v523_v2  ;;  %v527_v5 = vld [vmem:[#allocation2 + $0x24] ss:$16 sps:$4 sm:$0xff]   ;;  %v529_v6 = vld [vmem:[#allocation2 + $0x2c] ss:$16 sps:$4 sm:$0xff]   ;;  %v531_v7 = vld [vmem:[#allocation2 + $0x20] ss:$16 sps:$4 sm:$0xff]  }
  0x16   :  { %149 = vmatpush1.bf16.msra.mxu0 %v525_v3  ;;  %230 = vmatpush1.bf16.msra.mxu1 %v526_v4  ;;  %v532_v8 = vld [vmem:[#allocation2 + $0x28] ss:$16 sps:$4 sm:$0xff]   ;;  %vm132_vm0 = vcmask 261120   ;;  %v534_v10 = vld [vmem:[%s713_s0 + $0x8] sm:$0xff]   ;;  %v536_v12 = vld [vmem:[%s713_s0 + $0x18] sm:$0xff]   ;;  %v50_v15 = vshrl.u32 %v49_v14, 7 }
  0x17   :  { %150 = vmatprep.subr.bf16.mxu0 %v527_v5  ;;  %231 = vmatprep.subr.bf16.mxu1 %v529_v6  ;;  %v535_v11 = vld [vmem:[%s713_s0 + $0x10] sm:$0xff]   ;;  %v537_v13 = vld [vmem:[%s713_s0 + $0x20] ss:$0 sps:$4 sm:$0xff]   ;;  %s590_s0 = smov [#allocation5]  }
  0x18   :  { %v51_v16 = vsub.s32 0, %v50_v15  ;;  %v59_v17 = vsub.s32 2, %v50_v15  ;;  %v47_v18 = vld [vmem:[%s715_s2] sm:$0xf]  ;;  %v55_v19 = vsub.s32 1, %v50_v15  ;;  %v63_v20 = vsub.s32 3, %v50_v15 }
  0x19   :  { %s445_s2 = sshll.u32 %s590_s0, 4  ;;  %s446_s2 = int_to_ptr.vmem [resolvable:$true] %s445_s2 }
  0x1a   :  { %151 = vmatpush1.bf16.msra.mxu0 %v531_v7  ;;  %232 = vmatpush1.bf16.msra.mxu1 %v532_v8  ;;  %v654_v21 = vrot.slane %v47_v18, %v51_v16  ;;  %v656_v22 = vrot.slane %v47_v18, %v59_v17  ;;  %v658_v23 = vrot.slane %v47_v18, %v55_v19  ;;  %s560_s10 = scalar_lea.vmem %s446_s2, 2304  ;;  %p565_p9 = scmp.lt.s32.totalorder %s446_s2, %s446_s2 }
  0x1b   :  { %v660_v24 = vrot.slane %v47_v18, %v63_v20  ;;  %p561_p8 = scmp.ne.s32.totalorder %s446_s2, %s560_s10  ;;  %p566_p10 = scmp.lt.s32.totalorder %s560_s10, %s560_s10 }
  0x1d   :  { %470 = vmatmul.mubr.msk.bf16.vlgmr.msra.gmra.mrb[0].mxu0 %vm132_vm0, %v533_v9  ;;  %475 = vmatmul.mubr.msk.bf16.vlgmr.msra.gmra.mrb[0].mxu1 %vm132_vm0, %v533_v9  ;;  %p567_p11 = por %p566_p10, %p565_p9 }
  0x1e   :  { %190 = vmatprep.mubr.bf16.mxu0 %v589_v0  ;;  %271 = vmatprep.mubr.bf16.mxu1 %v589_v0 }
  0x1f   :  { %p568_p12 = pnand %p567_p11, %p561_p8 }
  0x25   :  { %471 = vmatmul.mubr.msk.bf16.gmra.mrb[4].mxu0 %vm132_vm0, %v534_v10  ;;  %476 = vmatmul.mubr.msk.bf16.gmra.mrb[4].mxu1 %vm132_vm0, %v534_v10 }
  0x26   :  { %200 = vmatprep.mubr.bf16.mxu0 %v589_v0  ;;  %281 = vmatprep.mubr.bf16.mxu1 %v589_v0 }
  0x2d   :  { %472 = vmatmul.mubr.msk.bf16.gmra.mrb[8].mxu0 %vm132_vm0, %v535_v11  ;;  %477 = vmatmul.mubr.msk.bf16.gmra.mrb[8].mxu1 %vm132_vm0, %v535_v11 }
  0x2e   :  { %210 = vmatprep.mubr.bf16.mxu0 %v589_v0  ;;  %291 = vmatprep.mubr.bf16.mxu1 %v589_v0 }
  0x35   :  { %473 = vmatmul.mubr.msk.bf16.gmra.mrb[12].mxu0 %vm132_vm0, %v536_v12  ;;  %478 = vmatmul.mubr.msk.bf16.gmra.mrb[12].mxu1 %vm132_vm0, %v536_v12 }
  0x36   :  { %220 = vmatprep.mubr.bf16.mxu0 %v589_v0  ;;  %301 = vmatprep.mubr.bf16.mxu1 %v589_v0 }
  0x3d   :  { %474 = vmatmul.mubr.msk.bf16.gmra.mrb[16].mxu0 %vm132_vm0, %v537_v13  ;;  %479 = vmatmul.mubr.msk.bf16.gmra.mrb[16].mxu1 %vm132_vm0, %v537_v13 }
  0xf0   :  { %v182_v25 = vpop.f32.mrb[0].mxu0  ;;  %v263_v26 = vpop.f32.mrb[0].mxu1 }
  0xf1   :  { %v183_v27 = vadd.f32 %v182_v25, %v654_v21  ;;  %v264_v28 = vadd.f32 %v263_v26, %v656_v22  ;;  %v184_v29 = vpop.f32.mrb[1].mxu0  ;;  %v265_v30 = vpop.f32.mrb[1].mxu1 }
  0xf2   :  { %v185_v31 = vadd.f32 %v184_v29, %v658_v23  ;;  %v266_v32 = vadd.f32 %v265_v30, %v660_v24  ;;  %v186_v33 = vpop.f32.mrb[2].mxu0  ;;  %v267_v34 = vpop.f32.mrb[2].mxu1 }
  0xf3   :  { %v187_v35 = vadd.f32 %v186_v33, %v654_v21  ;;  %v268_v36 = vadd.f32 %v267_v34, %v656_v22  ;;  %v188_v37 = vpop.f32.mrb[3].mxu0  ;;  %v269_v38 = vpop.f32.mrb[3].mxu1 }
  0xf4   :  { %v498_v39 = vpack.c.bf16 %v185_v31, %v183_v27  ;;  %v499_v40 = vpack.c.bf16 %v266_v32, %v264_v28  ;;  %v189_v41 = vadd.f32 %v188_v37, %v658_v23  ;;  %v270_v42 = vadd.f32 %v269_v38, %v660_v24 }
  0xf6   :  { %422 = vst [vmem:[#allocation5] sm:$0xff] %v498_v39  ;;  %423 = vst [vmem:[#allocation5 + $0x8] sm:$0xff] %v499_v40  ;;  %v500_v43 = vpack.c.bf16 %v189_v41, %v187_v35  ;;  %v501_v44 = vpack.c.bf16 %v270_v42, %v268_v36 }
  0xf8   :  { %424 = vst [vmem:[#allocation5 + $0x10] sm:$0xff] %v500_v43  ;;  %425 = vst [vmem:[#allocation5 + $0x18] sm:$0xff] %v501_v44  ;;  %v192_v45 = vpop.f32.mrb[4].mxu0  ;;  %v273_v46 = vpop.f32.mrb[4].mxu1 }
  0xf9   :  { %v193_v47 = vadd.f32 %v192_v45, %v654_v21  ;;  %v274_v48 = vadd.f32 %v273_v46, %v656_v22  ;;  %v194_v49 = vpop.f32.mrb[5].mxu0  ;;  %v275_v50 = vpop.f32.mrb[5].mxu1 }
  0xfa   :  { %v195_v51 = vadd.f32 %v194_v49, %v658_v23  ;;  %v276_v52 = vadd.f32 %v275_v50, %v660_v24  ;;  %v196_v53 = vpop.f32.mrb[6].mxu0  ;;  %v277_v54 = vpop.f32.mrb[6].mxu1 }
  0xfb   :  { %v197_v55 = vadd.f32 %v196_v53, %v654_v21  ;;  %v278_v56 = vadd.f32 %v277_v54, %v656_v22  ;;  %v198_v57 = vpop.f32.mrb[7].mxu0  ;;  %v279_v58 = vpop.f32.mrb[7].mxu1 }
  0xfc   :  { %v502_v59 = vpack.c.bf16 %v195_v51, %v193_v47  ;;  %v503_v60 = vpack.c.bf16 %v276_v52, %v274_v48  ;;  %v199_v61 = vadd.f32 %v198_v57, %v658_v23  ;;  %v280_v62 = vadd.f32 %v279_v58, %v660_v24 }
  0xfe   :  { %426 = vst [vmem:[#allocation5 + $0x20] sm:$0xff] %v502_v59  ;;  %427 = vst [vmem:[#allocation5 + $0x28] sm:$0xff] %v503_v60  ;;  %v504_v63 = vpack.c.bf16 %v199_v61, %v197_v55  ;;  %v505_v0 = vpack.c.bf16 %v280_v62, %v278_v56 }
 0x100   :  { %428 = vst [vmem:[#allocation5 + $0x30] sm:$0xff] %v504_v63  ;;  %429 = vst [vmem:[#allocation5 + $0x38] sm:$0xff] %v505_v0  ;;  %v202_v1 = vpop.f32.mrb[8].mxu0  ;;  %v283_v2 = vpop.f32.mrb[8].mxu1 }
 0x101   :  { %v203_v3 = vadd.f32 %v202_v1, %v654_v21  ;;  %v284_v4 = vadd.f32 %v283_v2, %v656_v22  ;;  %v204_v5 = vpop.f32.mrb[9].mxu0  ;;  %v285_v6 = vpop.f32.mrb[9].mxu1 }
 0x102   :  { %v205_v7 = vadd.f32 %v204_v5, %v658_v23  ;;  %v286_v8 = vadd.f32 %v285_v6, %v660_v24  ;;  %v206_v9 = vpop.f32.mrb[10].mxu0  ;;  %v287_v10 = vpop.f32.mrb[10].mxu1 }
 0x103   :  { %v207_v11 = vadd.f32 %v206_v9, %v654_v21  ;;  %v288_v12 = vadd.f32 %v287_v10, %v656_v22  ;;  %v208_v13 = vpop.f32.mrb[11].mxu0  ;;  %v289_v14 = vpop.f32.mrb[11].mxu1 }
 0x104   :  { %v506_v15 = vpack.c.bf16 %v205_v7, %v203_v3  ;;  %v507_v16 = vpack.c.bf16 %v286_v8, %v284_v4  ;;  %v209_v17 = vadd.f32 %v208_v13, %v658_v23  ;;  %v290_v18 = vadd.f32 %v289_v14, %v660_v24 }
 0x106   :  { %430 = vst [vmem:[#allocation5 + $0x40] sm:$0xff] %v506_v15  ;;  %431 = vst [vmem:[#allocation5 + $0x48] sm:$0xff] %v507_v16  ;;  %v508_v19 = vpack.c.bf16 %v209_v17, %v207_v11  ;;  %v509_v20 = vpack.c.bf16 %v290_v18, %v288_v12 }
 0x108   :  { %432 = vst [vmem:[#allocation5 + $0x50] sm:$0xff] %v508_v19  ;;  %433 = vst [vmem:[#allocation5 + $0x58] sm:$0xff] %v509_v20  ;;  %v212_v25 = vpop.f32.mrb[12].mxu0  ;;  %v293_v26 = vpop.f32.mrb[12].mxu1 }
 0x109   :  { %v213_v27 = vadd.f32 %v212_v25, %v654_v21  ;;  %v294_v28 = vadd.f32 %v293_v26, %v656_v22  ;;  %v214_v29 = vpop.f32.mrb[13].mxu0  ;;  %v295_v30 = vpop.f32.mrb[13].mxu1 }
 0x10a   :  { %v215_v31 = vadd.f32 %v214_v29, %v658_v23  ;;  %v296_v32 = vadd.f32 %v295_v30, %v660_v24  ;;  %v216_v33 = vpop.f32.mrb[14].mxu0  ;;  %v297_v34 = vpop.f32.mrb[14].mxu1 }
 0x10b   :  { %v217_v35 = vadd.f32 %v216_v33, %v654_v21  ;;  %v298_v36 = vadd.f32 %v297_v34, %v656_v22  ;;  %v218_v37 = vpop.f32.mrb[15].mxu0  ;;  %v299_v38 = vpop.f32.mrb[15].mxu1 }
 0x10c   :  { %v510_v39 = vpack.c.bf16 %v215_v31, %v213_v27  ;;  %v511_v40 = vpack.c.bf16 %v296_v32, %v294_v28  ;;  %v219_v41 = vadd.f32 %v218_v37, %v658_v23  ;;  %v300_v42 = vadd.f32 %v299_v38, %v660_v24 }
 0x10e   :  { %434 = vst [vmem:[#allocation5 + $0x60] sm:$0xff] %v510_v39  ;;  %435 = vst [vmem:[#allocation5 + $0x68] sm:$0xff] %v511_v40  ;;  %v512_v43 = vpack.c.bf16 %v219_v41, %v217_v35  ;;  %v513_v44 = vpack.c.bf16 %v300_v42, %v298_v36 }
 0x110   :  { %436 = vst [vmem:[#allocation5 + $0x70] sm:$0xff] %v512_v43  ;;  %437 = vst [vmem:[#allocation5 + $0x78] sm:$0xff] %v513_v44  ;;  %v222_v45 = vpop.f32.mrb[16].mxu0  ;;  %v303_v46 = vpop.f32.mrb[16].mxu1 }
 0x111   :  { %v223_v47 = vadd.f32 %v222_v45, %v654_v21  ;;  %v304_v48 = vadd.f32 %v303_v46, %v656_v22  ;;  %v224_v49 = vpop.f32.mrb[17].mxu0  ;;  %v305_v50 = vpop.f32.mrb[17].mxu1 }
 0x112   :  { %v225_v51 = vadd.f32 %v224_v49, %v658_v23  ;;  %v306_v52 = vadd.f32 %v305_v50, %v660_v24  ;;  %v226_v53 = vpop.f32.mrb[18].mxu0  ;;  %v307_v54 = vpop.f32.mrb[18].mxu1 }
 0x113   :  { %v227_v55 = vpop.f32.mrb[19].mxu0  ;;  %v308_v56 = vpop.f32.mrb[19].mxu1 }
 0x114   :  { %v514_v57 = vpack.c.bf16 %v225_v51, %v223_v47  ;;  %v515_v58 = vpack.c.bf16 %v306_v52, %v304_v48 }
 0x116   :  { %438 = vst [vmem:[#allocation5 + $0x80] sm:$0xff] %v514_v57  ;;  %439 = vst [vmem:[#allocation5 + $0x88] sm:$0xff] %v515_v58 }
 0x117   :  { %571 = shalt.err (!%p568_p12)
}
 0x118   :  { %s572_s13 = scalar_lea.hbm %s716_s3, 2304 }
 0x119   :  { %p573_p13 = scmp.ne.s32.totalorder %s716_s3, %s572_s13  ;;  %p576_p0 = scmp.lt.u32.totalorder %s572_s13, %s716_s3 }
 0x11b   :  { %p578_p1 = pnand %p576_p0, %p573_p13 }
 0x11d   :  { %581 = shalt.err (!%p578_p1)
}
 0x11e   :  { %451 = dma.vmem_to_hbm [thread:$0]  %s446_s2, 2304, %s716_s3, [#allocation4], %s587_s22, %s587_s22, %s588_s23  }
 0x11f   :  { %584 = dma.done.wait [#allocation4], 2304  }
 0x120   :  { %585 = vsyncadd [#allocation4], 4294964992 }
 0x121   :  { %455 = vsyncpa [#allocation3], 1 }
 0x122   :  { %456 = vsyncpa [#allocation4], 1 }

</bundles_post_ra>
